<compile_context>
chip_gen: v5e
topology: v5e:2x2
jax: 0.10.0
libtpu: 0.0.40
codegen_flags: <defaults>
</compile_context>

<pallas_src>
import functools

import jax
import jax.numpy as jnp
from jax.experimental import pallas as pl
from jax.experimental.pallas import tpu as pltpu


LN_EPS = 1e-5  # torch.nn.LayerNorm default


def _entity_proto_kernel(x_ref, w1_ref, p_ref, w2_ref, o_ref, *, bf16_tail):
    """One row-tile of the projector MLP.

    x_ref : (TM, F)  f32    input feature rows (cast to bf16 in vregs)
    w1_ref: (F, D)   bf16   first Linear weight (in, out), resident
    p_ref : (4, D)   f32    [b1; gamma; beta; b2], resident
    w2_ref: (D, D)   bf16   second Linear weight (in, out), resident
    o_ref : (TM, D)         output rows
    """
    # Linear 1 (MXU): bf16 operands (cast in vregs, zero marginal cost),
    # f32 accumulation.
    x = x_ref[...].astype(jnp.bfloat16)
    h = jnp.dot(x, w1_ref[...], preferred_element_type=jnp.float32)
    h = h + p_ref[0:1, :]                                   # + b1

    # LayerNorm over the lane dim.  Single-pass variance, clamped (f32
    # cancellation can make E[h^2]-mean^2 slightly negative).
    mean = jnp.mean(h, axis=-1, keepdims=True)
    mean_sq = jnp.mean(h * h, axis=-1, keepdims=True)
    var = jnp.maximum(mean_sq - mean * mean, 0.0)
    hn = (h - mean) * jax.lax.rsqrt(var + LN_EPS)            # f32 normalize

    # Affine + ReLU tail.  bf16 on v6e/v7x (bf16 VALU), f32 on v5e.
    if bf16_tail:
        hn = hn.astype(jnp.bfloat16)
        g = p_ref[1:2, :].astype(jnp.bfloat16)
        b = p_ref[2:3, :].astype(jnp.bfloat16)
        a = jnp.maximum(hn * g + b, 0)                       # already bf16
    else:
        a = jnp.maximum(hn * p_ref[1:2, :] + p_ref[2:3, :], 0.0)
        a = a.astype(jnp.bfloat16)

    # Dropout: inference mode -> identity (matches module.eval()).
    # TODO(synk): training-mode dropout would need pltpu.prng_seed /
    # pltpu.prng_random_bits masking.

    # Linear 2 (MXU): bf16 operands, f32 accumulation, + b2.
    o = jnp.dot(a, w2_ref[...], preferred_element_type=jnp.float32) + p_ref[3:4, :]
    o_ref[...] = o.astype(o_ref.dtype)


def _round_up(n, m):
    return (n + m - 1) // m * m


def prepare_params(w1, b1, gamma, beta, w2, b2):
    """One-time parameter prep (hoist out of the per-call path).

    Returns (w1_bf16, params4, w2_bf16) where params4 = [b1; gamma; beta; b2]
    stacked into a single (4, D) f32 block (one BlockSpec / DMA instead of 4).
    """
    w1_bf16 = w1.astype(jnp.bfloat16)
    w2_bf16 = w2.astype(jnp.bfloat16)
    params4 = jnp.stack(
        [jnp.asarray(b1, jnp.float32),
         jnp.asarray(gamma, jnp.float32),
         jnp.asarray(beta, jnp.float32),
         jnp.asarray(b2, jnp.float32)], axis=0)
    return w1_bf16, params4, w2_bf16


def _default_bf16_tail():
    """bf16 elementwise tail only where the VPU has a bf16 path (v6e/v7x)."""
    try:
        kind = jax.devices()[0].device_kind.lower()
    except Exception:
        return False
    return not any(v in kind for v in ("v2", "v3", "v4", "v5"))


@functools.partial(jax.jit, static_argnames=("tile_m", "bf16_tail", "out_dtype"))
def entity_prototype_forward(x, w1_bf16, params4, w2_bf16, *,
                             tile_m=1024, bf16_tail=False,
                             out_dtype=jnp.float32):
    """x: (N, F) f32, params from prepare_params -> (N, D) out_dtype."""
    N, F = x.shape
    D = w1_bf16.shape[1]

    # Row tile: big enough to amortize the ~0.35 us per-grid-step overhead,
    # capped so the grid keeps >=2 "parallel" steps (so both of v7x's TCs get
    # row tiles; no-op on v5e/v6e).  Multiple of 8 for f32 sublane tiling; the
    # ragged last block is masked by Pallas.
    tile = max(8, min(tile_m, _round_up(pl.cdiv(N, 2), 8)))
    grid = (pl.cdiv(N, tile),)

    return pl.pallas_call(
        functools.partial(_entity_proto_kernel, bf16_tail=bf16_tail),
        out_shape=jax.ShapeDtypeStruct((N, D), out_dtype),
        grid_spec=pltpu.PrefetchScalarGridSpec(
            num_scalar_prefetch=0,
            grid=grid,
            in_specs=[
                pl.BlockSpec((tile, F), lambda i: (i, 0)),   # x rows (streamed)
                pl.BlockSpec((F, D), lambda i: (0, 0)),      # W1 (resident)
                pl.BlockSpec((4, D), lambda i: (0, 0)),      # [b1;gamma;beta;b2]
                pl.BlockSpec((D, D), lambda i: (0, 0)),      # W2 (resident)
            ],
            out_specs=pl.BlockSpec((tile, D), lambda i: (i, 0)),
        ),
        compiler_params=pltpu.CompilerParams(
            dimension_semantics=("parallel",)),
    )(x, w1_bf16, params4, w2_bf16)


def reference_forward(x, w1, b1, gamma, beta, w2, b2, *,
                      matmul_dtype=jnp.float32):
    """Pure-JAX reference.  matmul_dtype=bf16 mirrors the kernel's dtype policy."""
    h = jnp.dot(x.astype(matmul_dtype), w1.astype(matmul_dtype),
                preferred_element_type=jnp.float32) + b1
    mean = jnp.mean(h, axis=-1, keepdims=True)
    var = jnp.mean((h - mean) ** 2, axis=-1, keepdims=True)
    h = (h - mean) / jnp.sqrt(var + LN_EPS)
    h = h * gamma + beta
    h = jnp.maximum(h, 0.0)
    return jnp.dot(h.astype(matmul_dtype), w2.astype(matmul_dtype),
                   preferred_element_type=jnp.float32) + b2


if __name__ == "__main__":
    # Config implied by the module: entity_feature_size=F, prototype_dim=D.
    F_DIM = 32    # entity_feature_size
    D_DIM = 128   # prototype_dim
    BATCH, SEQ = 2, 8

    key = jax.random.PRNGKey(0)
    kx, kx2, kw1, kb1, kw2, kb2 = jax.random.split(key, 6)

    # Deterministic synthetic parameters (shapes match nn.Linear / LayerNorm).
    w1 = jax.random.normal(kw1, (F_DIM, D_DIM), jnp.float32) * 0.05
    b1 = jax.random.normal(kb1, (D_DIM,), jnp.float32) * 0.01
    gamma = jnp.ones((D_DIM,), jnp.float32)     # LayerNorm weight init
    beta = jnp.zeros((D_DIM,), jnp.float32)     # LayerNorm bias init
    w2 = jax.random.normal(kw2, (D_DIM, D_DIM), jnp.float32) * 0.05
    b2 = jax.random.normal(kb2, (D_DIM,), jnp.float32) * 0.01

    # Hoisted, once-per-model parameter prep (bf16 weights + packed (4,D) params).
    w1_bf16, params4, w2_bf16 = prepare_params(w1, b1, gamma, beta, w2, b2)
    bf16_tail = _default_bf16_tail()

    # Case 1: module-sized input (batch=2, seq=8 entity rows, F=32 features).
    feats = jax.random.normal(kx, (BATCH, SEQ, F_DIM), jnp.float32)
    x_small = feats.reshape(BATCH * SEQ, F_DIM)
    out_small = jax.block_until_ready(
        entity_prototype_forward(x_small, w1_bf16, params4, w2_bf16,
                                 bf16_tail=bf16_tail))

    # Case 2: larger non-multiple row count to exercise the ragged multi-step
    # grid (1000 rows -> tile 504, grid=(2,), masked last block).
    x_big = jax.random.normal(kx2, (1000, F_DIM), jnp.float32)
    out_big = jax.block_until_ready(
        entity_prototype_forward(x_big, w1_bf16, params4, w2_bf16,
                                 bf16_tail=bf16_tail))

    for x_in, out in ((x_small, out_small), (x_big, out_big)):
        assert out.shape == (x_in.shape[0], D_DIM)
        # Check against a reference using the same bf16-operand / f32-accumulate
        # matmul policy as the kernel.
        ref_bf16 = reference_forward(x_in, w1, b1, gamma, beta, w2, b2,
                                     matmul_dtype=jnp.bfloat16)
        assert jnp.allclose(out, ref_bf16, atol=2e-2, rtol=2e-2), \
            "mismatch vs bf16-matmul reference"
        # Sanity check against the full-f32 module math (bf16 operand error).
        ref_f32 = reference_forward(x_in, w1, b1, gamma, beta, w2, b2,
                                    matmul_dtype=jnp.float32)
        assert jnp.allclose(out, ref_f32, atol=6e-2, rtol=6e-2), \
            "mismatch vs f32 reference"

    print("KERNEL_OK")
</pallas_src>

<mosaic_0001>
module attributes {stable_mosaic.version = 11 : i64} {
  func.func @_entity_proto_kernel(%arg0: i32, %arg1: memref<8x32xf32, #tpu.memory_space<vmem>>, %arg2: memref<32x128xbf16, #tpu.memory_space<vmem>>, %arg3: memref<4x128xf32, #tpu.memory_space<vmem>>, %arg4: memref<128x128xbf16, #tpu.memory_space<vmem>>, %arg5: memref<8x128xf32, #tpu.memory_space<vmem>>) attributes {dimension_semantics = [#tpu.dimension_semantics<parallel>], iteration_bounds = array<i64: 2>, scalar_prefetch = 0 : i64, scratch_operands = 0 : i64, tpu.core_type = #tpu.core_type<tc>, window_params = [{transform_indices = @transform_0, window_bounds = array<i64: 8, 32>}, {pipeline_mode = #tpu.pipeline_mode<synchronous>, transform_indices = @transform_1, window_bounds = array<i64: 32, 128>}, {pipeline_mode = #tpu.pipeline_mode<synchronous>, transform_indices = @transform_2, window_bounds = array<i64: 4, 128>}, {pipeline_mode = #tpu.pipeline_mode<synchronous>, transform_indices = @transform_3, window_bounds = array<i64: 128, 128>}, {transform_indices = @transform_4, window_bounds = array<i64: 8, 128>}]} {
    %c0 = arith.constant 0 : index
    %c0_0 = arith.constant 0 : index
    %0 = vector.load %arg1[%c0, %c0_0] : memref<8x32xf32, #tpu.memory_space<vmem>>, vector<8x32xf32>
    %1 = arith.truncf %0 : vector<8x32xf32> to vector<8x32xbf16>
    %c0_1 = arith.constant 0 : index
    %c0_2 = arith.constant 0 : index
    %2 = vector.load %arg2[%c0_1, %c0_2] : memref<32x128xbf16, #tpu.memory_space<vmem>>, vector<32x128xbf16>
    %cst = arith.constant dense<0.000000e+00> : vector<8x128xf32>
    %3 = tpu.matmul %1, %2, %cst {dimension_numbers = #tpu.dot_dimension_numbers<[1], [0], [0], [1], [0, 0, 1, 1], [], []>} : vector<8x32xbf16>, vector<32x128xbf16>, vector<8x128xf32> -> vector<8x128xf32>
    %c0_3 = arith.constant 0 : index
    %c0_4 = arith.constant 0 : index
    %4 = vector.load %arg3[%c0_3, %c0_4] : memref<4x128xf32, #tpu.memory_space<vmem>>, vector<1x128xf32>
    %5 = vector.broadcast %4 : vector<1x128xf32> to vector<8x128xf32>
    %6 = arith.addf %3, %5 : vector<8x128xf32>
    %cst_5 = arith.constant dense<0.000000e+00> : vector<8xf32>
    %7 = vector.multi_reduction <add>, %6, %cst_5 [1] : vector<8x128xf32> to vector<8xf32>
    %8 = vector.shape_cast %7 : vector<8xf32> to vector<8x1xf32>
    %cst_6 = arith.constant 1.280000e+02 : f32
    %9 = vector.broadcast %cst_6 : f32 to vector<8x1xf32>
    %10 = arith.divf %8, %9 : vector<8x1xf32>
    %11 = arith.mulf %6, %6 : vector<8x128xf32>
    %cst_7 = arith.constant dense<0.000000e+00> : vector<8xf32>
    %12 = vector.multi_reduction <add>, %11, %cst_7 [1] : vector<8x128xf32> to vector<8xf32>
    %13 = vector.shape_cast %12 : vector<8xf32> to vector<8x1xf32>
    %cst_8 = arith.constant 1.280000e+02 : f32
    %14 = vector.broadcast %cst_8 : f32 to vector<8x1xf32>
    %15 = arith.divf %13, %14 : vector<8x1xf32>
    %16 = arith.mulf %10, %10 : vector<8x1xf32>
    %17 = arith.subf %15, %16 : vector<8x1xf32>
    %cst_9 = arith.constant 0.000000e+00 : f32
    %18 = vector.broadcast %cst_9 : f32 to vector<8x1xf32>
    %19 = arith.maximumf %17, %18 : vector<8x1xf32>
    %20 = vector.broadcast %10 : vector<8x1xf32> to vector<8x128xf32>
    %21 = arith.subf %6, %20 : vector<8x128xf32>
    %cst_10 = arith.constant 9.99999974E-6 : f32
    %22 = vector.broadcast %cst_10 : f32 to vector<8x1xf32>
    %23 = arith.addf %19, %22 : vector<8x1xf32>
    %24 = math.rsqrt %23 : vector<8x1xf32>
    %25 = vector.broadcast %24 : vector<8x1xf32> to vector<8x128xf32>
    %26 = arith.mulf %21, %25 : vector<8x128xf32>
    %27 = arith.truncf %26 : vector<8x128xf32> to vector<8x128xbf16>
    %c1 = arith.constant 1 : index
    %c0_11 = arith.constant 0 : index
    %28 = vector.load %arg3[%c1, %c0_11] : memref<4x128xf32, #tpu.memory_space<vmem>>, vector<1x128xf32>
    %29 = arith.truncf %28 : vector<1x128xf32> to vector<1x128xbf16>
    %c2 = arith.constant 2 : index
    %c0_12 = arith.constant 0 : index
    %30 = vector.load %arg3[%c2, %c0_12] : memref<4x128xf32, #tpu.memory_space<vmem>>, vector<1x128xf32>
    %31 = arith.truncf %30 : vector<1x128xf32> to vector<1x128xbf16>
    %32 = vector.broadcast %29 : vector<1x128xbf16> to vector<8x128xbf16>
    %33 = arith.mulf %27, %32 : vector<8x128xbf16>
    %34 = vector.broadcast %31 : vector<1x128xbf16> to vector<8x128xbf16>
    %35 = arith.addf %33, %34 : vector<8x128xbf16>
    %cst_13 = arith.constant 0.000000e+00 : bf16
    %36 = vector.broadcast %cst_13 : bf16 to vector<8x128xbf16>
    %37 = arith.maximumf %35, %36 : vector<8x128xbf16>
    %c0_14 = arith.constant 0 : index
    %c0_15 = arith.constant 0 : index
    %38 = vector.load %arg4[%c0_14, %c0_15] : memref<128x128xbf16, #tpu.memory_space<vmem>>, vector<128x128xbf16>
    %cst_16 = arith.constant dense<0.000000e+00> : vector<8x128xf32>
    %39 = tpu.matmul %37, %38, %cst_16 {dimension_numbers = #tpu.dot_dimension_numbers<[1], [0], [0], [1], [0, 0, 1, 1], [], []>} : vector<8x128xbf16>, vector<128x128xbf16>, vector<8x128xf32> -> vector<8x128xf32>
    %c3 = arith.constant 3 : index
    %c0_17 = arith.constant 0 : index
    %40 = vector.load %arg3[%c3, %c0_17] : memref<4x128xf32, #tpu.memory_space<vmem>>, vector<1x128xf32>
    %41 = vector.broadcast %40 : vector<1x128xf32> to vector<8x128xf32>
    %42 = arith.addf %39, %41 : vector<8x128xf32>
    %c0_18 = arith.constant 0 : index
    %c0_19 = arith.constant 0 : index
    %43 = vector.load %arg5[%c0_18, %c0_19] : memref<8x128xf32, #tpu.memory_space<vmem>>, vector<8x128xf32>
    tpu.vector_store %arg5[%c0_18, %c0_19], %42 {strides = array<i32>} : memref<8x128xf32, #tpu.memory_space<vmem>>, vector<8x128xf32>,
    return
  }
  func.func @transform_0(%arg0: i32) -> (i32, i32) {
    %c0_i32 = arith.constant 0 : i32
    %c0_i32_0 = arith.constant 0 : i32
    return %arg0, %c0_i32 : i32, i32
  }
  func.func @transform_1(%arg0: i32) -> (i32, i32) {
    %c0_i32 = arith.constant 0 : i32
    %c0_i32_0 = arith.constant 0 : i32
    %c0_i32_1 = arith.constant 0 : i32
    return %c0_i32, %c0_i32_0 : i32, i32
  }
  func.func @transform_2(%arg0: i32) -> (i32, i32) {
    %c0_i32 = arith.constant 0 : i32
    %c0_i32_0 = arith.constant 0 : i32
    %c0_i32_1 = arith.constant 0 : i32
    return %c0_i32, %c0_i32_0 : i32, i32
  }
  func.func @transform_3(%arg0: i32) -> (i32, i32) {
    %c0_i32 = arith.constant 0 : i32
    %c0_i32_0 = arith.constant 0 : i32
    %c0_i32_1 = arith.constant 0 : i32
    return %c0_i32, %c0_i32_0 : i32, i32
  }
  func.func @transform_4(%arg0: i32) -> (i32, i32) {
    %c0_i32 = arith.constant 0 : i32
    %c0_i32_0 = arith.constant 0 : i32
    return %arg0, %c0_i32 : i32, i32
  }
}

</mosaic_0001>

<bundles_post_ra>
// kernel: entity_prototype_forward.1
= control target key start
LH: loop header
LB: loop body
LE: loop exit
PB: predicated region body
PF: predicated region fallthrough
CT: control target
= control target key end

     0   :  { %9 = vsyncpa [#allocation3], 0  ;;  %s1092_s0 = inlined_call_operand.hbm [shape: f32[16,32], index: 0, kind: input, shape index: {}]   ;;  %s1093_s1 = inlined_call_operand.hbm [shape: bf16[32,128], index: 1, kind: input, shape index: {}]   ;;  %s1094_s2 = inlined_call_operand.hbm [shape: f32[4,128], index: 2, kind: input, shape index: {}]   ;;  %s1095_s3 = inlined_call_operand.hbm [shape: bf16[128,128], index: 3, kind: input, shape index: {}]   ;;  %s1096_s4 = inlined_call_operand.hbm [shape: f32[16,128], index: 4, kind: output, shape index: {}]  }
   0x1   :  { %11 = vsyncpa [#allocation3 + $0x1], 0 }
   0x2   :  { %12 = vsyncpa [#allocation6], 0 }
   0x3   :  { %13 = vsyncpa [#allocation9], 0 }
   0x4   :  { %14 = vsyncpa [#allocation4], 0 }
   0x5   :  { %16 = vsyncpa [#allocation4 + $0x1], 0  ;;  %s932_s15 = smov 0   ;;  %s934_s16 = smov 0  }
   0x6   :  { %s936_s17 = smov 0   ;;  %s938_s18 = smov 0  }
   0x7 LB: > { %s153_s21 = sshll.u32 %s1093_s1, 4  ;;  %s956_s22 = sadd.s32 4294967295, %s899_s18   ;;  %s899_s18 = sphi %s938_s18, %s1107_s18   ;;  %s895_s17 = sphi %s936_s17, %s1106_s17   ;;  %s891_s16 = sphi %s934_s16, %s1105_s16   ;;  %s887_s15 = sphi %s932_s15, %s1104_s15   ;;  %s154_s21 = int_to_ptr.hbm [resolvable:$true] %s153_s21 }
   0x8   : > { %p551_p0 = scmp.ge.s32.totalorder %s899_s18, 1  ;;  %p43_p1 = scmp.eq.s32.totalorder %s956_s22, 0 }
   0x9   : > { %p142_p2 = scmp.lt.s32.totalorder %s899_s18, 3  ;;  %s901_s24 = smov [#allocation5]  }
   0xa   : > { %s155_s25 = sshll.u32 %s901_s24, 4  ;;  %s168_s28 = sshll.u32 %s1094_s2, 4  ;;  %s156_s25 = int_to_ptr.vmem [resolvable:$true] %s155_s25  ;;  %s169_s28 = int_to_ptr.hbm [resolvable:$true] %s168_s28 }
   0xb   : > { %p961_p3 = pnand %p551_p0, %p142_p2  ;;  %s179_s6 = sshll.u32 %s1095_s3, 4  ;;  %s180_s6 = int_to_ptr.hbm [resolvable:$true] %s179_s6 }
   0xc   : > { %s902_s7 = smov [#allocation7]   ;;  %s903_s9 = smov 64  }
   0xd   : > { %p635_p4 = pneg %p961_p3  ;;  %s170_s8 = sshll.u32 %s902_s7, 4  ;;  %s171_s8 = int_to_ptr.vmem [resolvable:$true] %s170_s8 }
   0xe   : > { %s904_s10 = smov 4   ;;  %s905_s11 = smov [#allocation8]  }
   0xf   : > { %p973_p6 = pnand %p635_p4, %p43_p1  ;;  %s181_s12 = sshll.u32 %s905_s11, 4  ;;  %s182_s12 = int_to_ptr.vmem [resolvable:$true] %s181_s12 }
  0x10   : > { %s550_s13 = sadd.s32 4294967294, %s899_s18   ;;  %s988_s14 = sadd.s32 1, %s899_s18  }
  0x11   : > { %638 = dma.hbm_to_vmem [thread:$0]  (!%p973_p6), %s154_s21, 256, %s156_s25, [#allocation6], %s903_s9, %s903_s9, %s904_s10  }
  0x12   : > { %641 = dma.hbm_to_vmem [thread:$0]  (!%p973_p6), %s169_s28, 64, %s171_s8, [#allocation6]  }
  0x13   : > { %644 = dma.hbm_to_vmem [thread:$0]  (!%p973_p6), %s180_s6, 1024, %s182_s12, [#allocation9], %s903_s9, %s903_s9, %s904_s10  }
  0x14   : > { %s29_s19 = sadd.s32 1, %s895_s17  ;;  %s26_s20 = ssub.s32 %s899_s18, %s988_s14 }
  0x15   : > { %p36_p7 = scmp.ne.s32.totalorder %s895_s17, %s891_s16  ;;  %p27_p8 = scmp.eq.s32.totalorder %s26_s20, 0 }
  0x16   : > { %p37_p9 = scmp.eq.s32.totalorder %s899_s18, 0  ;;  %p42_p10 = scmp.ne.s32.totalorder %s891_s16, %s887_s15 }
  0x17   : > { %p129_p11 = scmp.eq.s32.totalorder %s956_s22, 1  ;;  %p135_p0 = scmp.eq.s32.totalorder %s550_s13, 1 }
  0x18   : > { %s1000_s21 = scalar_select %p27_p8, %s895_s17, %s29_s19  }
  0x19   : > { %p1004_p12 = por %p43_p1, %p42_p10  ;;  %p1008_p13 = por %p129_p11, %p36_p7 }
  0x1a   : > { %p38_p2 = por %p37_p9, %p36_p7  ;;  %s195_s26 = sand.u32 1, %s895_s17  }
  0x1b   : > { %p1013_p4 = por %p135_p0, %p42_p10  ;;  %p656_p6 = scmp.lt.s32.totalorder %s899_s18, 2 }
  0x1c   : > { %s556_s28 = sshll.u32 %s195_s26, 3  ;;  %s557_s29 = sshll.u32 %s899_s18, 3 }
  0x1d   : > { %s203_s6 = scalar_lea.hbm %s1092_s0, %s557_s29  ;;  %s199_s8 = scalar_lea.vmem [#allocation2], %s556_s28 }
  0x1e   : > { %s205_s7 = sshll.u32 %s203_s6, 4  ;;  %s207_s9 = sshll.u32 %s199_s8, 4  ;;  %s206_s7 = int_to_ptr.hbm [resolvable:$true] %s205_s7  ;;  %s208_s9 = int_to_ptr.vmem [resolvable:$true] %s207_s9 }
  0x1f   : > { %p1022_p8 = pnand %p656_p6, %p38_p2  ;;  %s196_s11 = scalar_lea.sflag [#allocation3], %s195_s26 }
  0x20   : > { %s795_s12 = sshra.s32 %s206_s7, 4  ;;  %s802_s28 = scalar_lea.hbm %s1092_s0, 16  ;;  %s796_s12 = int_to_ptr.hbm [resolvable:$true] %s795_s12 }
  0x21   : > { %s797_s13 = scalar_lea.hbm %s796_s12, 8  ;;  %p799_p9 = pneg %p1022_p8 }
  0x22   : > { %p798_p7 = scmp.ne.s32.totalorder %s796_s12, %s797_s13  ;;  %p803_p0 = scmp.lt.s32.totalorder %s796_s12, %s1092_s0 }
  0x23   : > { %p804_p2 = scmp.lt.s32.totalorder %s802_s28, %s797_s13 }
  0x24   : > { %p800_p10 = pnand %p799_p9, %p798_p7 }
  0x25   : > { %p805_p6 = por %p804_p2, %p803_p0 }
  0x26   : > { %p801_p11 = pneg %p800_p10 }
  0x28   : > { %p806_p5 = pnand %p805_p6, %p801_p11 }
  0x2a   : > { %809 = shalt.err (!%p806_p5)
}
  0x2b   : > { %648 = dma.hbm_to_vmem [thread:$0]  (!%p1022_p8), %s206_s7, 128, %s208_s9, %s196_s11  }
  0x2c   : > { %216 = sbr.rel (%p961_p3) target bundleno = 492 (0x1ec), region = 36  ;;  %s1039_s26 = sand.u32 (!%p961_p3), 1, %s891_s16  }
  0x2d   : > { %s559_s5 = sshll.u32 (!%p961_p3), %s1039_s26, 3  ;;  %s219_s6 = scalar_lea.sflag (!%p961_p3), [#allocation3], %s1039_s26 }
  0x2e   : > { %s222_s8 = scalar_lea.vmem (!%p961_p3), [#allocation2], %s559_s5 }
  0x31   : > { %870 = dma.done.wait (%p1004_p12), %s219_s6, 128  }
  0x32   : > { %872 = vsyncadd (%p1004_p12), %s219_s6, 4294967168 }
  0x33   : > { %874 = dma.done.wait (%p43_p1), [#allocation6], 320  }
  0x34   : > { %876 = vsyncadd (%p43_p1), [#allocation6], 4294966976 }
  0x35   : > { %878 = dma.done.wait (%p43_p1), [#allocation9], 1024  }
  0x36   : > { %880 = vsyncadd (%p43_p1), [#allocation9], 4294966272  ;;  %v610_v0 = vld [vmem:[#allocation5 + $0x8] sm:$0xff]  ;;  %v609_v1 = vld [vmem:[#allocation5] sm:$0xff]  ;;  %vm284_vm0 = vcmask 261120   ;;  %v906_v9 = vmov 128.0  }
  0x37   : > { %294 = vmatpush.bf16.msra.mxu0 %v610_v0  ;;  %v264_v2 = vld [vmem:[%s222_s8] sm:$0xff]  ;;  %701 = vrcp.f32 %v906_v9  ;;  %v617_v14 = vld [vmem:[#allocation8 + $0x30] sm:$0xff]  ;;  %s606_s23 = sshll.u32 %s956_s22, 3  ;;  %s262_s10 = scalar_lea.vmem [#allocation10], %s559_s5 }
  0x38   : > { %v265_v3 = vpack.c.bf16 %v264_v2, %v264_v2  ;;  %v699_v4 = vld [vmem:[#allocation7] ss:$0 sm:$0xff]  ;;  %v616_v16 = vld [vmem:[#allocation8 + $0x28] sm:$0xff]  ;;  %v615_v19 = vld [vmem:[#allocation8 + $0x20] sm:$0xff]  ;;  %s446_s9 = scalar_lea.hbm %s1096_s4, %s606_s23  ;;  %s448_s11 = sshll.u32 %s262_s10, 4  ;;  %s449_s11 = int_to_ptr.vmem [resolvable:$true] %s448_s11 }
  0x39   : > { %v618_v12 = vld [vmem:[#allocation8 + $0x38] sm:$0xff]  ;;  %v613_v23 = vld [vmem:[#allocation8 + $0x10] sm:$0xff]  ;;  %v612_v27 = vld [vmem:[#allocation8 + $0x8] sm:$0xff]  ;;  %s450_s12 = sshll.u32 %s446_s9, 4  ;;  %s436_s13 = scalar_lea.sflag [#allocation4], %s1039_s26  ;;  %s451_s12 = int_to_ptr.hbm [resolvable:$true] %s450_s12 }
  0x3a   : > { %421 = vmatpush.bf16.msra.mxu1 %v618_v12  ;;  %v614_v21 = vld [vmem:[#allocation8 + $0x18] sm:$0xff]  ;;  %v611_v30 = vld [vmem:[#allocation8] sm:$0xff]  ;;  %s839_s19 = sshra.s32 %s451_s12, 4  ;;  %s845_s29 = scalar_lea.hbm %s1096_s4, 16  ;;  %s840_s19 = int_to_ptr.hbm [resolvable:$true] %s839_s19 }
  0x3b   : > { %295 = vmatpush.bf16.msra.mxu0 %v609_v1  ;;  %v332_v32 = vld [vmem:[#allocation7 + $0x1] sm:$0x1]  ;;  %v334_v38 = vld [vmem:[#allocation7 + $0x2] sm:$0x1]  ;;  %v700_v59 = vld [vmem:[#allocation7 + $0x3] ss:$0 sm:$0xff]  ;;  %p846_p12 = scmp.lt.s32.totalorder %s840_s19, %s1096_s4 }
  0x3c   : > { %v333_v35 = vpack.c.bf16 %v332_v32, %v332_v32  ;;  %v335_v41 = vpack.c.bf16 %v334_v38, %v334_v38  ;;  %s841_s20 = scalar_lea.hbm %s840_s19, 8 }
  0x3d   : > { %v702_v10 = vpop.eup %701  ;;  %p842_p1 = scmp.ne.s32.totalorder %s840_s19, %s841_s20  ;;  %p847_p8 = scmp.lt.s32.totalorder %s845_s29, %s841_s20 }
  0x3e   : > { %572 = vmatmul.msk.bf16.vlgmr.msra.gmra.mxu0 %vm284_vm0, %v265_v3  ;;  %v304_v11 = vmul.f32 128.0, %v702_v10  ;;  %422 = vmatpush.bf16.msra.mxu1 %v617_v14  ;;  %vm308_vm1 = vweird.f32 %v702_v10  ;;  %v337_v39 = vpack.i.b16 %v333_v35, %v333_v35  ;;  %v345_v47 = vpack.i.b16 %v335_v41, %v335_v41 }
  0x3f   : > { %p843_p3 = pnand %p842_p1, %p1008_p13  ;;  %p848_p7 = por %p847_p8, %p846_p12 }
  0x40   : > { %v305_v13 = vsub.f32 1.0, %v304_v11  ;;  %v339_v44 = vperm.slane %v337_v39, 0  ;;  %v347_v51 = vperm.slane %v345_v47, 0 }
  0x41   : > { %p844_p5 = pneg %p843_p3 }
  0x42   : > { %v306_v15 = vmul.f32 %v702_v10, %v305_v13  ;;  %423 = vmatpush.bf16.msra.mxu1 %v616_v16  ;;  %v341_v49 = vunpack.c.l.bf16 %v339_v44  ;;  %v349_v54 = vunpack.c.l.bf16 %v347_v51 }
  0x43   : > { %p849_p9 = pnand %p848_p7, %p844_p5 }
  0x44   : > { %v307_v17 = vadd.f32 %v702_v10, %v306_v15 }
  0x46   : > { %v309_v20 = vsel %vm308_vm1, %v702_v10, %v307_v17  ;;  %424 = vmatpush.bf16.msra.mxu1 %v615_v19 }
  0x4a   : > { %425 = vmatpush.bf16.msra.mxu1 %v614_v21 }
  0x4e   : > { %426 = vmatpush.bf16.msra.mxu1 %v613_v23 }
  0x52   : > { %427 = vmatpush.bf16.msra.mxu1 %v612_v27 }
  0x56   : > { %428 = vmatpush.bf16.msra.mxu1 %v611_v30 }
  0xbb   : > { %v297_v5 = vpop.f32.mrf.mxu0 }
  0xbc   : > { %v298_v6 = vadd.f32 %v699_v4, %v297_v5 }
  0xbe   : > { %301 = vadd.xlane.f32.xlu0 %v298_v6  ;;  %v311_v8 = vmul.f32 %v298_v6, %v298_v6 }
  0xc3   : > { %v299_v7 = vpop.f32.mrf.mxu0 }
  0xc6   : > { %312 = vadd.xlane.f32.xlu0 %v311_v8 }
 0x131   : > { %v302_v18 = vpop.xlane.xlu0 %301 }
 0x132   : > { %v310_v22 = vmul.f32 %v309_v20, %v302_v18 }
 0x134   : > { %v315_v25 = vmul.f32 %v310_v22, %v310_v22  ;;  %v318_v43 = vsub.f32 %v298_v6, %v310_v22 }
 0x139   : > { %v313_v24 = vpop.xlane.xlu0 %312 }
 0x13a   : > { %v314_v26 = vmul.f32 %v313_v24, %v309_v20 }
 0x13c   : > { %v316_v28 = vsub.f32 %v314_v26, %v315_v25 }
 0x13e   : > { %v317_v29 = vmax.f32 %v316_v28, 0.0 }
 0x140   : > { %v319_v31 = vadd.f32 1e-05, %v317_v29 }
 0x142   : > { %703 = vrsqrt.f32 %v319_v31  ;;  %vm326_vm3 = vweird.f32 %v319_v31 }
 0x148   : > { %v704_v33 = vpop.eup %703 }
 0x149   : > { %v321_v34 = vmul.f32 %v704_v33, %v319_v31  ;;  %vm327_vm2 = vweird.f32 %v704_v33 }
 0x14a   : > { %vm328_vm4 = vmor %vm326_vm3, %vm327_vm2 }
 0x14b   : > { %v322_v36 = vmul.f32 %v704_v33, %v321_v34 }
 0x14d   : > { %v323_v37 = vmul.f32 0.5, %v322_v36 }
 0x14f   : > { %v324_v40 = vsub.f32 1.5, %v323_v37 }
 0x151   : > { %v325_v42 = vmul.f32 %v704_v33, %v324_v40 }
 0x153   : > { %v329_v45 = vsel %vm328_vm4, %v704_v33, %v325_v42 }
 0x154   : > { %v330_v46 = vmul.f32 %v329_v45, %v318_v43 }
 0x156   : > { %v331_v48 = vpack.c.bf16 %v330_v46, %v330_v46 }
 0x158   : > { %v340_v50 = vunpack.c.l.bf16 %v331_v48 }
 0x15a   : > { %v342_v52 = vmul.f32 %v341_v49, %v340_v50 }
 0x15c   : > { %v343_v53 = vpack.c.bf16 %v342_v52, %v342_v52 }
 0x15e   : > { %v348_v55 = vunpack.c.l.bf16 %v343_v53 }
 0x160   : > { %v350_v56 = vadd.f32 %v349_v54, %v348_v55 }
 0x162   : > { %v353_v57 = vmax.f32 %v350_v56, 0.0 }
 0x164   : > { %v354_v58 = vpack.c.bf16 %v353_v57, %v353_v57 }
 0x166   : > { %429 = vmatmul.bf16.vlgmr.msra.gmra.mxu1 %v354_v58 }
 0x1e3   : > { %v430_v60 = vpop.f32.mrf.mxu1 }
 0x1e4   : > { %v431_v61 = vadd.f32 %v700_v59, %v430_v60 }
 0x1e6   : > { %434 = vst [vmem:[%s262_s10] sm:$0xff] %v431_v61 }
 0x1e7   : > { %852 = shalt.err (!%p849_p9)
}
 0x1e8   : > { %633 = dma.vmem_to_hbm [thread:$0]  (%p1008_p13), %s449_s11, 128, %s451_s12, %s436_s13  }
 0x1eb   : > { %v432_v62 = vpop.f32.mrf.mxu1 }
 0x1ec PF: > { %s462_s26 = sand.u32 1, %s887_s15   ;;  %p1103_p10 = scmp.ge.s32.totalorder %s899_s18, 2 }
 0x1ed   : > { %s463_s6 = scalar_lea.sflag [#allocation4], %s462_s26 }
 0x1ee   : > { %p650_p11 = pnand %p1103_p10, %p1013_p4 }
 0x1f0   : > { %p651_p0 = pneg %p650_p11 }
 0x1f2   : > { %882 = dma.done.wait (%p651_p0), %s463_s6, 128  }
 0x1f3   : > { %884 = vsyncadd (%p651_p0), %s463_s6, 4294967168  ;;  %p19_p2 = scmp.ge.s32.totalorder %s988_s14, 4   ;;  %s1104_s15 = smov %s891_s16 }
 0x1f4   : > { %s1105_s16 = smov %s895_s17  ;;  %s1106_s17 = smov %s1000_s21 }
 0x1f5   : > { %s1107_s18 = smov %s988_s14  ;;  %21 = sbr.rel (!%p19_p2) target bundleno = 7 (0x7), region = 93 }
 0x1fa   :  { %469 = vsyncpa [#allocation3], 1 }
 0x1fb   :  { %471 = vsyncpa [#allocation3 + $0x1], 1 }
 0x1fc   :  { %472 = vsyncpa [#allocation6], 1 }
 0x1fd   :  { %473 = vsyncpa [#allocation9], 1 }
 0x1fe   :  { %474 = vsyncpa [#allocation4], 1 }
 0x1ff   :  { %476 = vsyncpa [#allocation4 + $0x1], 1 }

</bundles_post_ra>
